<compile_context>
chip_gen: v7x
topology: tpu7x:2x2x1
jax: 0.10.0
libtpu: 0.0.40
codegen_flags: <defaults>
</compile_context>

<pallas_src>
import jax
import jax.numpy as jnp
from jax.experimental import pallas as pl
from jax.experimental.pallas import tpu as pltpu

# ----------------------------- hyper-parameters -------------------------------
DIM = 32          # model dim (Linear in/out)
MLP_DIM = 64      # hidden dim
BATCH = 2
SEQ = 8


# ------------------------------- Pallas kernel --------------------------------
def _ffn_kernel(xT_ref, w1_ref, b1_ref, w2_ref, b2_ref, oT_ref):
    # xT_ref: (D, TM)        -- token axis on lanes (lane-dense for TM >= 128)
    # w1_ref: (MLP, D), b1_ref: (MLP, 1)   -- PyTorch-native (out, in) layout
    # w2_ref: (D, MLP), b2_ref: (D, 1)
    # oT_ref: (D, TM)
    hT = jnp.dot(w1_ref[...], xT_ref[...],
                 preferred_element_type=jnp.float32) + b1_ref[...]
    # SiLU(x) = x * sigmoid(x); logistic goes to the EUP, mul to the VPU (f32).
    hT = hT * jax.nn.sigmoid(hT)
    # TODO(synk): training-mode Dropout (pltpu.prng_* Bernoulli mask) omitted;
    # inference dropout is identity, matching nn.Dropout.eval().
    oT_ref[...] = (jnp.dot(w2_ref[...], hT,
                           preferred_element_type=jnp.float32)
                   + b2_ref[...]).astype(oT_ref.dtype)


# --------------------------------- wrapper -------------------------------------
def feedforward(x, params):
    """x: (B, T, DIM) float32; params from make_params() (PyTorch layout)."""
    B, T, D = x.shape
    mlp = params["w1"].shape[0]
    M = B * T

    # Token axis goes on the lanes: stream x^T (D, M), produce o^T (D, M).
    xT = x.reshape(M, D).astype(jnp.float32).T

    # Token-tile selection:
    #  * large aligned M  -> biggest 128-multiple tile up to 512 (lane-dense,
    #    ~85% of HBM roofline territory, trivially fits v7x's 32 MiB scoped VMEM)
    #  * otherwise        -> one block covering all of M (grid = (1,)): at tiny
    #    M the kernel is launch/step-overhead bound, so fewer steps wins.
    if M % 128 == 0:
        tm = 512 if M % 512 == 0 else (256 if M % 256 == 0 else 128)
        tm = min(tm, M)
    else:
        tm = M
    grid = (M // tm,)
    # Only ask for megacore sharding when there is more than one tile of work.
    dim_sem = ("parallel",) if grid[0] > 1 else ("arbitrary",)

    cost = pl.CostEstimate(
        flops=4 * M * D * mlp,               # two matmuls
        transcendentals=M * mlp,             # one logistic per hidden element
        bytes_accessed=4 * (2 * M * D + 2 * D * mlp + mlp + D))

    oT = pl.pallas_call(
        _ffn_kernel,
        out_shape=jax.ShapeDtypeStruct((D, M), jnp.float32),
        grid_spec=pltpu.PrefetchScalarGridSpec(
            num_scalar_prefetch=0,
            grid=grid,
            in_specs=[
                pl.BlockSpec((D, tm), lambda i: (0, i)),      # x^T token tile
                pl.BlockSpec((mlp, D), lambda i: (0, 0)),     # W1 (resident)
                pl.BlockSpec((mlp, 1), lambda i: (0, 0)),     # b1 (resident)
                pl.BlockSpec((D, mlp), lambda i: (0, 0)),     # W2 (resident)
                pl.BlockSpec((D, 1), lambda i: (0, 0)),       # b2 (resident)
            ],
            out_specs=pl.BlockSpec((D, tm), lambda i: (0, i)),
        ),
        compiler_params=pltpu.CompilerParams(
            dimension_semantics=dim_sem),
        cost_estimate=cost,
    )(xT, params["w1"], params["b1"], params["w2"], params["b2"])

    return oT.T.reshape(B, T, D)


# ---------------------- deterministic synthetic parameters ---------------------
def make_params(key):
    k1, k2, k3, k4 = jax.random.split(key, 4)
    # PyTorch-native Linear layout: weight (out, in), bias (out,) kept as (out, 1)
    # so the kernel adds it directly to the (out, tm) accumulator.
    w1 = 0.2 * jax.random.normal(k1, (MLP_DIM, DIM), jnp.float32)
    b1 = 0.1 * jax.random.normal(k2, (MLP_DIM, 1), jnp.float32)
    w2 = 0.2 * jax.random.normal(k3, (DIM, MLP_DIM), jnp.float32)
    b2 = 0.1 * jax.random.normal(k4, (DIM, 1), jnp.float32)
    return dict(w1=w1, b1=b1, w2=w2, b2=b2)


# ------------------- plain-JAX reference (mirrors torch forward) ---------------
def reference_forward(x, p):
    h = jnp.einsum("btd,md->btm", x, p["w1"]) + p["b1"][:, 0]
    h = h * jax.nn.sigmoid(h)                                # SiLU
    return jnp.einsum("btm,dm->btd", h, p["w2"]) + p["b2"][:, 0]


if __name__ == "__main__":
    key = jax.random.PRNGKey(0)
    kx, kp = jax.random.split(key)
    params = make_params(kp)
    x = jax.random.normal(kx, (BATCH, SEQ, DIM), jnp.float32)

    out = feedforward(x, params)
    out = jax.block_until_ready(out)

    ref = reference_forward(x, params)
    assert out.shape == (BATCH, SEQ, DIM)
    if not bool(jnp.allclose(out, ref, atol=1e-4, rtol=1e-4)):
        raise SystemExit(
            f"mismatch: max abs err = {float(jnp.max(jnp.abs(out - ref)))}")
    print("KERNEL_OK")
</pallas_src>

<mosaic_0001>
module attributes {stable_mosaic.version = 11 : i64} {
  func.func @_ffn_kernel(%arg0: i32, %arg1: memref<32x16xf32, #tpu.memory_space<vmem>>, %arg2: memref<64x32xf32, #tpu.memory_space<vmem>>, %arg3: memref<64x1xf32, #tpu.memory_space<vmem>>, %arg4: memref<32x64xf32, #tpu.memory_space<vmem>>, %arg5: memref<32x1xf32, #tpu.memory_space<vmem>>, %arg6: memref<32x16xf32, #tpu.memory_space<vmem>>) attributes {dimension_semantics = [#tpu.dimension_semantics<arbitrary>], iteration_bounds = array<i64: 1>, scalar_prefetch = 0 : i64, scratch_operands = 0 : i64, tpu.core_type = #tpu.core_type<tc>, window_params = [{transform_indices = @transform_0, window_bounds = array<i64: 32, 16>}, {pipeline_mode = #tpu.pipeline_mode<synchronous>, transform_indices = @transform_1, window_bounds = array<i64: 64, 32>}, {pipeline_mode = #tpu.pipeline_mode<synchronous>, transform_indices = @transform_2, window_bounds = array<i64: 64, 1>}, {pipeline_mode = #tpu.pipeline_mode<synchronous>, transform_indices = @transform_3, window_bounds = array<i64: 32, 64>}, {pipeline_mode = #tpu.pipeline_mode<synchronous>, transform_indices = @transform_4, window_bounds = array<i64: 32, 1>}, {transform_indices = @transform_5, window_bounds = array<i64: 32, 16>}]} {
    %c0 = arith.constant 0 : index
    %c0_0 = arith.constant 0 : index
    %0 = vector.load %arg2[%c0, %c0_0] : memref<64x32xf32, #tpu.memory_space<vmem>>, vector<64x32xf32>
    %c0_1 = arith.constant 0 : index
    %c0_2 = arith.constant 0 : index
    %1 = vector.load %arg1[%c0_1, %c0_2] : memref<32x16xf32, #tpu.memory_space<vmem>>, vector<32x16xf32>
    %cst = arith.constant dense<0.000000e+00> : vector<64x16xf32>
    %2 = tpu.matmul %0, %1, %cst {dimension_numbers = #tpu.dot_dimension_numbers<[1], [0], [0], [1], [0, 0, 1, 1], [], []>} : vector<64x32xf32>, vector<32x16xf32>, vector<64x16xf32> -> vector<64x16xf32>
    %c0_3 = arith.constant 0 : index
    %c0_4 = arith.constant 0 : index
    %3 = vector.load %arg3[%c0_3, %c0_4] : memref<64x1xf32, #tpu.memory_space<vmem>>, vector<64x1xf32>
    %4 = vector.broadcast %3 : vector<64x1xf32> to vector<64x16xf32>
    %5 = arith.addf %2, %4 : vector<64x16xf32>
    %6 = arith.negf %5 : vector<64x16xf32>
    %7 = math.exp %6 : vector<64x16xf32>
    %cst_5 = arith.constant 1.000000e+00 : f32
    %8 = vector.broadcast %cst_5 : f32 to vector<64x16xf32>
    %9 = arith.addf %8, %7 : vector<64x16xf32>
    %10 = arith.divf %8, %9 : vector<64x16xf32>
    %11 = arith.mulf %5, %10 : vector<64x16xf32>
    %c0_6 = arith.constant 0 : index
    %c0_7 = arith.constant 0 : index
    %12 = vector.load %arg4[%c0_6, %c0_7] : memref<32x64xf32, #tpu.memory_space<vmem>>, vector<32x64xf32>
    %cst_8 = arith.constant dense<0.000000e+00> : vector<32x16xf32>
    %13 = tpu.matmul %12, %11, %cst_8 {dimension_numbers = #tpu.dot_dimension_numbers<[1], [0], [0], [1], [0, 0, 1, 1], [], []>} : vector<32x64xf32>, vector<64x16xf32>, vector<32x16xf32> -> vector<32x16xf32>
    %c0_9 = arith.constant 0 : index
    %c0_10 = arith.constant 0 : index
    %14 = vector.load %arg5[%c0_9, %c0_10] : memref<32x1xf32, #tpu.memory_space<vmem>>, vector<32x1xf32>
    %15 = vector.broadcast %14 : vector<32x1xf32> to vector<32x16xf32>
    %16 = arith.addf %13, %15 : vector<32x16xf32>
    %c0_11 = arith.constant 0 : index
    %c0_12 = arith.constant 0 : index
    %17 = vector.load %arg6[%c0_11, %c0_12] : memref<32x16xf32, #tpu.memory_space<vmem>>, vector<32x16xf32>
    tpu.vector_store %arg6[%c0_11, %c0_12], %16 {strides = array<i32>} : memref<32x16xf32, #tpu.memory_space<vmem>>, vector<32x16xf32>,
    return
  }
  func.func @transform_0(%arg0: i32) -> (i32, i32) {
    %c0_i32 = arith.constant 0 : i32
    %c0_i32_0 = arith.constant 0 : i32
    return %c0_i32, %arg0 : i32, i32
  }
  func.func @transform_1(%arg0: i32) -> (i32, i32) {
    %c0_i32 = arith.constant 0 : i32
    %c0_i32_0 = arith.constant 0 : i32
    %c0_i32_1 = arith.constant 0 : i32
    return %c0_i32, %c0_i32_0 : i32, i32
  }
  func.func @transform_2(%arg0: i32) -> (i32, i32) {
    %c0_i32 = arith.constant 0 : i32
    %c0_i32_0 = arith.constant 0 : i32
    %c0_i32_1 = arith.constant 0 : i32
    return %c0_i32, %c0_i32_0 : i32, i32
  }
  func.func @transform_3(%arg0: i32) -> (i32, i32) {
    %c0_i32 = arith.constant 0 : i32
    %c0_i32_0 = arith.constant 0 : i32
    %c0_i32_1 = arith.constant 0 : i32
    return %c0_i32, %c0_i32_0 : i32, i32
  }
  func.func @transform_4(%arg0: i32) -> (i32, i32) {
    %c0_i32 = arith.constant 0 : i32
    %c0_i32_0 = arith.constant 0 : i32
    %c0_i32_1 = arith.constant 0 : i32
    return %c0_i32, %c0_i32_0 : i32, i32
  }
  func.func @transform_5(%arg0: i32) -> (i32, i32) {
    %c0_i32 = arith.constant 0 : i32
    %c0_i32_0 = arith.constant 0 : i32
    return %c0_i32, %arg0 : i32, i32
  }
}

</mosaic_0001>

<bundles_post_ra>
// kernel: tpu_custom_call.1
= control target key start
LH: loop header
LB: loop body
LE: loop exit
PB: predicated region body
PF: predicated region fallthrough
CT: control target
= control target key end

     0   :  { %vm80_vm0 = vcmask 261120   ;;  %v546_v3 = vmov 0   ;;  %vm294_vm1 = vcmask 523264   ;;  %vm392_vm2 = vcmask 130048   ;;  %s685_s0 = inlined_call_operand.vmem [shape: f32[32,16], index: 0, kind: input, shape index: {}]   ;;  %s686_s1 = inlined_call_operand.vmem [shape: f32[64,32], index: 1, kind: input, shape index: {}]   ;;  %s687_s2 = inlined_call_operand.vmem [shape: f32[64,1], index: 2, kind: input, shape index: {}]   ;;  %s688_s4 = inlined_call_operand.vmem [shape: f32[32,1], index: 4, kind: input, shape index: {}]   ;;  %s689_s3 = inlined_call_operand.vmem [shape: f32[32,64], index: 3, kind: input, shape index: {}]   ;;  %s690_s5 = inlined_call_operand.vmem [shape: f32[32,16], index: 5, kind: output, shape index: {}]  }
   0x1   :  { %v28_v0 = vld [vmem:[%s685_s0] sm:$0xff]  ;;  %v29_v1 = vld [vmem:[%s685_s0 + $0x8] sm:$0xff]  ;;  %v30_v2 = vld [vmem:[%s685_s0 + $0x10] sm:$0xff]  ;;  %512 = vset.pattern.permute.xlu0 %v546_v3  ;;  %513 = vset.pattern.permute.xlu1 %v546_v3 }
   0x2   :  { %v487_v4 = vpack.c.bf16 %v29_v1, %v28_v0  ;;  %v31_v5 = vld [vmem:[%s685_s0 + $0x18] sm:$0xff]  ;;  %v20_v6 = vld [vmem:[%s686_s1] sm:$0xff]  ;;  %v34_v9 = vld [vmem:[%s687_s2 + $0x10] sm:$0xff] }
   0x3   :  { %v491_v7 = vpack.c.bf16 %v31_v5, %v30_v2  ;;  %453 = vmatprep.mubr.msk.f32.mxu0 %vm80_vm0, %v20_v6  ;;  %v32_v8 = vld [vmem:[%s687_s2] sm:$0xff]  ;;  %52 = vperm.xlu1 %513, %v34_v9   ;;  %v33_v10 = vld [vmem:[%s687_s2 + $0x8] sm:$0xff]  ;;  %v35_v11 = vld [vmem:[%s687_s2 + $0x18] sm:$0xff] }
   0x4   :  { %488 = vmatprep.subr.bf16.mxu0 %v487_v4  ;;  %42 = vperm.xlu0 %512, %v32_v8   ;;  %v21_v12 = vld [vmem:[%s686_s1 + $0x8] sm:$0xff]  ;;  %v22_v13 = vld [vmem:[%s686_s1 + $0x10] sm:$0xff]  ;;  %v36_v14 = vld [vmem:[%s687_s2 + $0x20] sm:$0xff] }
   0x5   :  { %490 = vmatpush3.bf16.msra.mxu0 %v487_v4  ;;  %v37_v15 = vld [vmem:[%s687_s2 + $0x28] sm:$0xff]  ;;  %v23_v16 = vld [vmem:[%s686_s1 + $0x18] sm:$0xff]  ;;  %v24_v17 = vld [vmem:[%s686_s1 + $0x20] sm:$0xff] }
   0x6   :  { %492 = vmatprep.subr.bf16.mxu0 %v491_v7  ;;  %v38_v18 = vld [vmem:[%s687_s2 + $0x30] sm:$0xff]  ;;  %v39_v19 = vld [vmem:[%s687_s2 + $0x38] sm:$0xff]  ;;  %v25_v20 = vld [vmem:[%s686_s1 + $0x28] sm:$0xff] }
   0x7   :  { %57 = vperm.xlu1 %513, %v35_v11   ;;  %v26_v21 = vld [vmem:[%s686_s1 + $0x30] sm:$0xff]  ;;  %v270_v22 = vld [vmem:[%s688_s4] sm:$0xff]  ;;  %v271_v23 = vld [vmem:[%s688_s4 + $0x8] sm:$0xff] }
   0x8   :  { %47 = vperm.xlu0 %512, %v33_v10   ;;  %v27_v24 = vld [vmem:[%s686_s1 + $0x38] sm:$0xff]  ;;  %v272_v25 = vld [vmem:[%s688_s4 + $0x10] sm:$0xff]  ;;  %v266_v27 = vld [vmem:[%s689_s3] sm:$0xff] }
   0x9   :  { %494 = vmatpush3.bf16.msra.mxu0 %v491_v7  ;;  %v273_v26 = vld [vmem:[%s688_s4 + $0x18] sm:$0xff]  ;;  %481 = vmatprep.mubr.msk.f32.mxu1 %vm294_vm1, %v266_v27 }
   0xb   :  { %67 = vperm.xlu1 %513, %v37_v15  }
   0xc   :  { %454 = vmatmul.mubr.msk.f32.vlgmr.msra.gmra.mrb[0].mxu0 %vm80_vm0, %v21_v12  ;;  %62 = vperm.xlu0 %512, %v36_v14  }
   0xd   :  { %456 = vmatprep.mubr.msk.f32.mxu0 %vm80_vm0, %v22_v13 }
   0xf   :  { %77 = vperm.xlu1 %513, %v39_v19  }
  0x10   :  { %457 = vmatmul.mubr.msk.f32.gmra.mrb[2].mxu0 %vm80_vm0, %v23_v16  ;;  %72 = vperm.xlu0 %512, %v38_v18  }
  0x11   :  { %459 = vmatprep.mubr.msk.f32.mxu0 %vm80_vm0, %v24_v17 }
  0x13   :  { %281 = vperm.xlu1 %513, %v271_v23  }
  0x14   :  { %460 = vmatmul.mubr.msk.f32.gmra.mrb[4].mxu0 %vm80_vm0, %v25_v20  ;;  %276 = vperm.xlu0 %512, %v270_v22  }
  0x15   :  { %462 = vmatprep.mubr.msk.f32.mxu0 %vm80_vm0, %v26_v21 }
  0x17   :  { %291 = vperm.xlu1 %513, %v273_v26  }
  0x18   :  { %463 = vmatmul.mubr.msk.f32.gmra.mrb[6].mxu0 %vm80_vm0, %v27_v24  ;;  %286 = vperm.xlu0 %512, %v272_v25  }
  0x82   :  { %v53_v29 = vpop.permute.xlu1 %52 }
  0x83   :  { %v43_v28 = vpop.permute.xlu0 %42 }
  0x86   :  { %v58_v31 = vpop.permute.xlu1 %57 }
  0x87   :  { %v48_v30 = vpop.permute.xlu0 %47 }
  0x8a   :  { %v68_v41 = vpop.permute.xlu1 %67 }
  0x8b   :  { %v63_v43 = vpop.permute.xlu0 %62 }
  0x8e   :  { %v78_v51 = vpop.permute.xlu1 %77 }
  0x8f   :  { %v73_v54 = vpop.permute.xlu0 %72 }
  0xdf   :  { %v455_v32 = vpop.f32.mrb[0].mxu0 }
  0xe0   :  { %v177_v33 = vadd.f32 %v455_v32, %v48_v30  ;;  %v171_v34 = vpop.f32.mrb[1].mxu0  ;;  %v267_v32 = vld [vmem:[%s689_s3 + $0x8] sm:$0xff] }
  0xe1   :  { %v172_v35 = vadd.f32 %v171_v34, %v43_v28  ;;  %v269_v34 = vld [vmem:[%s689_s3 + $0x18] sm:$0xff] }
  0xe2   :  { %v410_v36 = vmul.f32 -1.442695, %v177_v33 }
  0xe3   :  { %v409_v37 = vmul.f32 -1.442695, %v172_v35  ;;  %v458_v38 = vpop.f32.mrb[2].mxu0 }
  0xe4   :  { %514 = vpow2.f32 %v410_v36  ;;  %v187_v39 = vadd.f32 %v458_v38, %v58_v31  ;;  %v181_v40 = vpop.f32.mrb[3].mxu0  ;;  %v277_v36 = vpop.permute.xlu0 %276 }
  0xe5   :  { %516 = vpow2.f32 %v409_v37  ;;  %v182_v42 = vadd.f32 %v181_v40, %v53_v29 }
  0xe6   :  { %v412_v44 = vmul.f32 -1.442695, %v187_v39 }
  0xe7   :  { %v411_v45 = vmul.f32 -1.442695, %v182_v42  ;;  %v461_v46 = vpop.f32.mrb[4].mxu0 }
  0xe8   :  { %518 = vpow2.f32 %v412_v44  ;;  %v197_v47 = vadd.f32 %v461_v46, %v68_v41  ;;  %v191_v48 = vpop.f32.mrb[5].mxu0 }
  0xe9   :  { %520 = vpow2.f32 %v411_v45  ;;  %v192_v49 = vadd.f32 %v191_v48, %v63_v43  ;;  %v287_v43 = vpop.permute.xlu0 %286 }
  0xea   :  { %v414_v50 = vmul.f32 -1.442695, %v197_v47 }
  0xeb   :  { %v413_v52 = vmul.f32 -1.442695, %v192_v49  ;;  %v464_v53 = vpop.f32.mrb[6].mxu0 }
  0xec   :  { %522 = vpow2.f32 %v414_v50  ;;  %v207_v55 = vadd.f32 %v464_v53, %v78_v51  ;;  %v201_v56 = vpop.f32.mrb[7].mxu0 }
  0xed   :  { %524 = vpow2.f32 %v413_v52  ;;  %v202_v57 = vadd.f32 %v201_v56, %v73_v54 }
  0xee   :  { %v515_v58 = vpop.eup %514  ;;  %v416_v59 = vmul.f32 -1.442695, %v207_v55 }
  0xef   :  { %v517_v60 = vpop.eup %516  ;;  %v235_v61 = vadd.f32 1.0, %v515_v58  ;;  %v415_v62 = vmul.f32 -1.442695, %v202_v57 }
  0xf0   :  { %v234_v63 = vadd.f32 1.0, %v517_v60  ;;  %526 = vpow2.f32 %v416_v59 }
  0xf1   :  { %528 = vrcp.f32 %v235_v61 }
  0xf2   :  { %v519_v0 = vpop.eup %518  ;;  %530 = vrcp.f32 %v234_v63 }
  0xf3   :  { %v521_v1 = vpop.eup %520  ;;  %v237_v2 = vadd.f32 1.0, %v519_v0  ;;  %532 = vpow2.f32 %v415_v62 }
  0xf4   :  { %v236_v3 = vadd.f32 1.0, %v521_v1 }
  0xf5   :  { %534 = vrcp.f32 %v237_v2 }
  0xf6   :  { %v523_v4 = vpop.eup %522  ;;  %536 = vrcp.f32 %v236_v3 }
  0xf7   :  { %v525_v5 = vpop.eup %524  ;;  %v239_v6 = vadd.f32 1.0, %v523_v4 }
  0xf8   :  { %v238_v7 = vadd.f32 1.0, %v525_v5 }
  0xf9   :  { %538 = vrcp.f32 %v239_v6 }
  0xfa   :  { %v527_v8 = vpop.eup %526  ;;  %540 = vrcp.f32 %v238_v7 }
  0xfb   :  { %v529_v9 = vpop.eup %528  ;;  %v241_v10 = vadd.f32 1.0, %v527_v8 }
  0xfc   :  { %v531_v11 = vpop.eup %530  ;;  %v259_v12 = vmul.f32 %v529_v9, %v177_v33  ;;  %v268_v33 = vld [vmem:[%s689_s3 + $0x10] sm:$0xff] }
  0xfd   :  { %v533_v13 = vpop.eup %532  ;;  %v258_v14 = vmul.f32 %v531_v11, %v172_v35  ;;  %542 = vrcp.f32 %v241_v10  ;;  %v282_v35 = vpop.permute.xlu1 %281 }
  0xfe   :  { %v240_v15 = vadd.f32 1.0, %v533_v13 }
  0xff   :  { %v535_v16 = vpop.eup %534  ;;  %v495_v17 = vpack.c.bf16 %v259_v12, %v258_v14 }
 0x100   :  { %v537_v18 = vpop.eup %536  ;;  %v261_v19 = vmul.f32 %v535_v16, %v187_v39  ;;  %544 = vrcp.f32 %v240_v15 }
 0x101   :  { %v260_v20 = vmul.f32 %v537_v18, %v182_v42  ;;  %496 = vmatprep.subr.bf16.mxu1 %v495_v17  ;;  %v292_v41 = vpop.permute.xlu1 %291 }
 0x102   :  { %498 = vmatpush3.bf16.msra.mxu1 %v495_v17 }
 0x103   :  { %v539_v21 = vpop.eup %538  ;;  %v499_v22 = vpack.c.bf16 %v261_v19, %v260_v20 }
 0x104   :  { %v541_v23 = vpop.eup %540  ;;  %v263_v24 = vmul.f32 %v539_v21, %v197_v47 }
 0x105   :  { %v262_v25 = vmul.f32 %v541_v23, %v192_v49  ;;  %500 = vmatprep.subr.bf16.mxu1 %v499_v22 }
 0x106   :  { %502 = vmatpush3.bf16.msra.mxu1 %v499_v22 }
 0x107   :  { %v543_v26 = vpop.eup %542  ;;  %v503_v27 = vpack.c.bf16 %v263_v24, %v262_v25 }
 0x108   :  { %v265_v28 = vmul.f32 %v543_v26, %v207_v55 }
 0x109   :  { %504 = vmatprep.subr.bf16.mxu1 %v503_v27 }
 0x10a   :  { %v545_v29 = vpop.eup %544  ;;  %506 = vmatpush3.bf16.msra.mxu1 %v503_v27 }
 0x10b   :  { %v264_v30 = vmul.f32 %v545_v29, %v202_v57 }
 0x10d   :  { %v507_v31 = vpack.c.bf16 %v265_v28, %v264_v30 }
 0x10f   :  { %508 = vmatprep.subr.bf16.mxu1 %v507_v31 }
 0x110   :  { %510 = vmatpush3.bf16.msra.mxu1 %v507_v31 }
 0x113   :  { %482 = vmatmul.mubr.msk.f32.vlgmr.msra.gmra.mrb[0].mxu1 %vm294_vm1, %v267_v32 }
 0x114   :  { %484 = vmatprep.mubr.msk.f32.mxu1 %vm294_vm1, %v268_v33 }
 0x117   :  { %485 = vmatmul.mubr.msk.f32.gmra.mrb[2].mxu1 %vm294_vm1, %v269_v34 }
 0x1e6   :  { %v483_v37 = vpop.f32.mrb[0].mxu1 }
 0x1e7   :  { %v379_v38 = vadd.f32 %v483_v37, %v282_v35  ;;  %v373_v39 = vpop.f32.mrb[1].mxu1 }
 0x1e8   :  { %v374_v40 = vadd.f32 %v373_v39, %v277_v36 }
 0x1e9   :  { %394 = vst.msk [vmem:[%s690_s5 + $0x8] sm:$0xff] %vm392_vm2, %v379_v38 }
 0x1ea   :  { %393 = vst.msk [vmem:[%s690_s5] sm:$0xff] %vm392_vm2, %v374_v40  ;;  %v486_v42 = vpop.f32.mrb[2].mxu1 }
 0x1eb   :  { %v389_v44 = vadd.f32 %v486_v42, %v292_v41  ;;  %v383_v45 = vpop.f32.mrb[3].mxu1 }
 0x1ec   :  { %v384_v46 = vadd.f32 %v383_v45, %v287_v43 }
 0x1ed   :  { %396 = vst.msk [vmem:[%s690_s5 + $0x18] sm:$0xff] %vm392_vm2, %v389_v44 }
 0x1ee   :  { %395 = vst.msk [vmem:[%s690_s5 + $0x10] sm:$0xff] %vm392_vm2, %v384_v46 }

</bundles_post_ra>
